<compile_context>
chip_gen: v6e
topology: v6e:2x2x1
jax: 0.10.0
libtpu: 0.0.40
codegen_flags: <defaults>
</compile_context>

<pallas_src>
import functools
import math

import jax
import jax.numpy as jnp
from jax import lax
from jax.experimental import pallas as pl
from jax.experimental.pallas import tpu as pltpu


def _attn_kernel(scale_ref, *refs, dropout_p):
    # refs = ([seed_ref if dropout], q_ref, k_ref, v_ref, o_ref)
    if dropout_p > 0.0:
        seed_ref, q_ref, k_ref, v_ref, o_ref = refs
    else:
        q_ref, k_ref, v_ref, o_ref = refs

    # qk[b, i, j] = sum_d q[b, i, d] * k[b, j, d]
    # Contraction on the lane dim D -- no materialized transpose of k.
    qk = lax.dot_general(
        q_ref[...], k_ref[...],
        dimension_numbers=(((2,), (2,)), ((0,), (0,))),
        preferred_element_type=jnp.float32)            # (TB, S, S) f32

    # softmax(qk * scale): fold the (positive) scale into the exp argument so
    # only the small (TB, S, S) tensor is scaled (max commutes with it).
    scale = scale_ref[0]                               # 1 / inv_scale_factor
    m = jnp.max(qk, axis=-1, keepdims=True)
    e = jnp.exp((qk - m) * scale)
    denom = jnp.sum(e, axis=-1, keepdims=True)
    probs = e * pl.reciprocal(denom, approx=True)      # EUP vrcp (free slot)

    # Dropout (dropout_p is a static python float; 0.0 -> compiled out and the
    # seed operand is not even passed in).
    if dropout_p > 0.0:
        pltpu.prng_seed(seed_ref[0] + pl.program_id(0))
        bits = pltpu.prng_random_bits(probs.shape)     # uint32
        thresh = jnp.uint32(min(int(dropout_p * (2.0 ** 32)), 2 ** 32 - 1))
        keep_scale = 1.0 / (1.0 - dropout_p)           # precomputed multiply
        probs = jnp.where(bits >= thresh, probs * keep_scale, 0.0)

    # output = probs @ v on the MXU, bf16 operands / f32 accumulation.
    # v_ref is already bf16 (cast once in the wrapper).
    out = lax.dot_general(
        probs.astype(jnp.bfloat16), v_ref[...],
        dimension_numbers=(((2,), (1,)), ((0,), (0,))),
        preferred_element_type=jnp.float32)            # (TB, S, D)
    o_ref[...] = out.astype(o_ref.dtype)


def _pick_tb(bh, s, d, cap=32, vmem_budget=24 * 1024 * 1024):
    """Pick TB = a divisor of BH (no padding), <= cap, within a rough VMEM
    budget, and giving >= 2 grid blocks whenever BH >= 2 (v7x: 2 TCs)."""
    if bh <= 1:
        return 1
    # Padded per-(batch,head) VMEM estimate: double-buffered q/k (f32) and v
    # (bf16) blocks, ~3 f32 (S,S) softmax temporaries, output block.
    sp = -(-s // 8) * 8
    dp = max(128, -(-d // 128) * 128)
    ssp = max(128, -(-s // 128) * 128)
    per = 2 * (2 * sp * dp * 4 + sp * dp * 2) + 3 * sp * ssp * 4 + 2 * sp * dp * 4
    cap = max(1, min(cap, vmem_budget // max(per, 1)))
    limit = min(cap, bh // 2)          # force n_blocks >= 2 when bh >= 2
    tb = 1
    for div in range(2, limit + 1):
        if bh % div == 0:
            tb = div
    return tb


def attention(query, key, value, inv_scale_factor, *, dropout_p=0.0, seed=0):
    """query/key/value: (B, H, S, D) float32, matching the PyTorch module."""
    B, H, S, D = query.shape
    BH = B * H

    q = query.reshape(BH, S, D)
    k = key.reshape(BH, S, D)
    # v is consumed as bf16 by the PV matmul; cast once here (halves its DMA
    # bytes and VMEM footprint, removes a full-block in-kernel cast).
    v = value.reshape(BH, S, D).astype(jnp.bfloat16)

    TB = _pick_tb(BH, S, D)            # divisor of BH -> no jnp.pad copies
    n_blocks = BH // TB

    # Pass the reciprocal so the kernel multiplies instead of dividing.
    scale_arr = (jnp.float32(1.0)
                 / jnp.asarray(inv_scale_factor, jnp.float32)).reshape(1)

    tile_spec = pl.BlockSpec((TB, S, D), lambda b: (b, 0, 0))
    smem_spec = pl.BlockSpec(memory_space=pltpu.MemorySpace.SMEM)

    args = [scale_arr]
    in_specs = [smem_spec]
    if dropout_p > 0.0:
        args.append(jnp.asarray([seed], dtype=jnp.int32))
        in_specs.append(smem_spec)
    args += [q, k, v]
    in_specs += [tile_spec, tile_spec, tile_spec]

    out = pl.pallas_call(
        functools.partial(_attn_kernel, dropout_p=float(dropout_p)),
        out_shape=jax.ShapeDtypeStruct((BH, S, D), query.dtype),
        grid=(n_blocks,),
        in_specs=in_specs,
        out_specs=tile_spec,
        compiler_params=pltpu.CompilerParams(
            dimension_semantics=("parallel",)),  # independent (b,h) blocks
    )(*args)

    return out.reshape(B, H, S, D)


def _reference(query, key, value, inv_scale_factor):
    qk = jnp.einsum("bhqd,bhkd->bhqk", query, key)
    scaled = qk / inv_scale_factor
    probs = jax.nn.softmax(scaled, axis=-1)
    # dropout_p = 0.0 -> identity
    return jnp.einsum("bhqk,bhkd->bhqd", probs, value)


if __name__ == "__main__":
    inv_scale_factor = 1.0 / math.sqrt(64)

    rng = jax.random.PRNGKey(0)
    kq, kk, kv = jax.random.split(rng, 3)
    # Shapes from the PyTorch script: (1, 1, 12, 64)
    query = jax.random.normal(kq, (1, 1, 12, 64), dtype=jnp.float32)
    key = jax.random.normal(kk, (1, 1, 12, 64), dtype=jnp.float32)
    value = jax.random.normal(kv, (1, 1, 12, 64), dtype=jnp.float32)

    # Model(num_heads=1, batch_size=1, dropout_p=0.0) -> deterministic forward.
    out = attention(query, key, value, inv_scale_factor, dropout_p=0.0)
    out = jax.block_until_ready(out)

    ref = _reference(query, key, value, inv_scale_factor)
    assert out.shape == (1, 1, 12, 64)
    # Tolerance accounts for bf16 operands in the PV matmul + approx reciprocal.
    assert jnp.allclose(out, ref, atol=2e-2, rtol=2e-2), \
        float(jnp.max(jnp.abs(out - ref)))
    print("KERNEL_OK")
</pallas_src>

<mosaic_0001>
module attributes {stable_mosaic.version = 11 : i64} {
  func.func @_attn_kernel(%arg0: i32, %arg1: memref<1xf32, #tpu.memory_space<smem>>, %arg2: memref<1x12x64xf32, #tpu.memory_space<vmem>>, %arg3: memref<1x12x64xf32, #tpu.memory_space<vmem>>, %arg4: memref<1x12x64xbf16, #tpu.memory_space<vmem>>, %arg5: memref<1x12x64xf32, #tpu.memory_space<vmem>>) attributes {dimension_semantics = [#tpu.dimension_semantics<parallel>], iteration_bounds = array<i64: 1>, scalar_prefetch = 0 : i64, scratch_operands = 0 : i64, tpu.core_type = #tpu.core_type<tc>, window_params = [{transform_indices = @transform_0, window_bounds = array<i64: 1>}, {transform_indices = @transform_1, window_bounds = array<i64: 1, 12, 64>}, {transform_indices = @transform_2, window_bounds = array<i64: 1, 12, 64>}, {transform_indices = @transform_3, window_bounds = array<i64: 1, 12, 64>}, {transform_indices = @transform_4, window_bounds = array<i64: 1, 12, 64>}]} {
    %c0 = arith.constant 0 : index
    %c0_0 = arith.constant 0 : index
    %c0_1 = arith.constant 0 : index
    %0 = vector.load %arg2[%c0, %c0_0, %c0_1] : memref<1x12x64xf32, #tpu.memory_space<vmem>>, vector<1x12x64xf32>
    %c0_2 = arith.constant 0 : index
    %c0_3 = arith.constant 0 : index
    %c0_4 = arith.constant 0 : index
    %1 = vector.load %arg3[%c0_2, %c0_3, %c0_4] : memref<1x12x64xf32, #tpu.memory_space<vmem>>, vector<1x12x64xf32>
    %cst = arith.constant dense<0.000000e+00> : vector<1x12x12xf32>
    %2 = tpu.matmul %0, %1, %cst {dimension_numbers = #tpu.dot_dimension_numbers<[2], [2], [1], [1], [0, 0, 0, 1, 1, 1], [0], [0]>} : vector<1x12x64xf32>, vector<1x12x64xf32>, vector<1x12x12xf32> -> vector<1x12x12xf32>
    %c0_5 = arith.constant 0 : index
    %3 = memref.load %arg1[%c0_5] : memref<1xf32, #tpu.memory_space<smem>>
    %cst_6 = arith.constant dense<0xFF800000> : vector<1x12xf32>
    %4 = vector.multi_reduction <maximumf>, %2, %cst_6 [2] : vector<1x12x12xf32> to vector<1x12xf32>
    %5 = vector.shape_cast %4 : vector<1x12xf32> to vector<1x12x1xf32>
    %6 = vector.broadcast %5 : vector<1x12x1xf32> to vector<1x12x12xf32>
    %7 = arith.subf %2, %6 : vector<1x12x12xf32>
    %8 = vector.broadcast %3 : f32 to vector<1x12x12xf32>
    %9 = arith.mulf %7, %8 : vector<1x12x12xf32>
    %10 = math.exp %9 : vector<1x12x12xf32>
    %cst_7 = arith.constant dense<0.000000e+00> : vector<1x12xf32>
    %11 = vector.multi_reduction <add>, %10, %cst_7 [2] : vector<1x12x12xf32> to vector<1x12xf32>
    %12 = vector.shape_cast %11 : vector<1x12xf32> to vector<1x12x1xf32>
    %13 = tpu.reciprocal %12 {approx = true} : vector<1x12x1xf32> -> vector<1x12x1xf32>
    %14 = vector.broadcast %13 : vector<1x12x1xf32> to vector<1x12x12xf32>
    %15 = arith.mulf %10, %14 : vector<1x12x12xf32>
    %16 = arith.truncf %15 : vector<1x12x12xf32> to vector<1x12x12xbf16>
    %c0_8 = arith.constant 0 : index
    %c0_9 = arith.constant 0 : index
    %c0_10 = arith.constant 0 : index
    %17 = vector.load %arg4[%c0_8, %c0_9, %c0_10] : memref<1x12x64xbf16, #tpu.memory_space<vmem>>, vector<1x12x64xbf16>
    %cst_11 = arith.constant dense<0.000000e+00> : vector<1x12x64xf32>
    %18 = tpu.matmul %16, %17, %cst_11 {dimension_numbers = #tpu.dot_dimension_numbers<[2], [1], [1], [2], [0, 0, 0, 1, 1, 2], [0], [0]>} : vector<1x12x12xbf16>, vector<1x12x64xbf16>, vector<1x12x64xf32> -> vector<1x12x64xf32>
    %c0_12 = arith.constant 0 : index
    %c0_13 = arith.constant 0 : index
    %c0_14 = arith.constant 0 : index
    %19 = vector.load %arg5[%c0_12, %c0_13, %c0_14] : memref<1x12x64xf32, #tpu.memory_space<vmem>>, vector<1x12x64xf32>
    tpu.vector_store %arg5[%c0_12, %c0_13, %c0_14], %18 {strides = array<i32>} : memref<1x12x64xf32, #tpu.memory_space<vmem>>, vector<1x12x64xf32>,
    return
  }
  func.func @transform_0(%arg0: i32) -> i32 {
    %c0_i32 = arith.constant 0 : i32
    %c0_i32_0 = arith.constant 0 : i32
    return %c0_i32 : i32
  }
  func.func @transform_1(%arg0: i32) -> (i32, i32, i32) {
    %c0_i32 = arith.constant 0 : i32
    %c0_i32_0 = arith.constant 0 : i32
    %c0_i32_1 = arith.constant 0 : i32
    return %arg0, %c0_i32, %c0_i32_0 : i32, i32, i32
  }
  func.func @transform_2(%arg0: i32) -> (i32, i32, i32) {
    %c0_i32 = arith.constant 0 : i32
    %c0_i32_0 = arith.constant 0 : i32
    %c0_i32_1 = arith.constant 0 : i32
    return %arg0, %c0_i32, %c0_i32_0 : i32, i32, i32
  }
  func.func @transform_3(%arg0: i32) -> (i32, i32, i32) {
    %c0_i32 = arith.constant 0 : i32
    %c0_i32_0 = arith.constant 0 : i32
    %c0_i32_1 = arith.constant 0 : i32
    return %arg0, %c0_i32, %c0_i32_0 : i32, i32, i32
  }
  func.func @transform_4(%arg0: i32) -> (i32, i32, i32) {
    %c0_i32 = arith.constant 0 : i32
    %c0_i32_0 = arith.constant 0 : i32
    %c0_i32_1 = arith.constant 0 : i32
    return %arg0, %c0_i32, %c0_i32_0 : i32, i32, i32
  }
}

</mosaic_0001>

<bundles_post_ra>
// kernel: tpu_custom_call.1
= control target key start
LH: loop header
LB: loop body
LE: loop exit
PB: predicated region body
PF: predicated region fallthrough
CT: control target
= control target key end

     0   :  { %vm23_vm0 = vcmask 523264   ;;  %vm112_vm1 = vcmask 97280   ;;  %vm116_vm2 = vcmask 93184   ;;  %vm150_vm3 = vcmask 1045504   ;;  %s301_s2 = inlined_call_operand.vmem [shape: f32[1,12,64], index: 2, kind: input, shape index: {}]   ;;  %s302_s1 = inlined_call_operand.vmem [shape: f32[1,12,64], index: 1, kind: input, shape index: {}]   ;;  %s303_s0 = inlined_call_operand.<no memory space> [shape: f32[1], index: 0, kind: input, shape index: {}]   ;;  %s304_s3 = inlined_call_operand.vmem [shape: bf16[1,12,64], index: 3, kind: input, shape index: {}]   ;;  %s305_s4 = inlined_call_operand.vmem [shape: f32[1,12,64], index: 4, kind: output, shape index: {}]  }
   0x1   :  { %v21_v0 = vld [vmem:[%s301_s2] sm:$0xff]  ;;  %v22_v1 = vld [vmem:[%s301_s2 + $0x8] sm:$0xf]  ;;  %v122_v9 = vstv %s303_s0  ;;  %v238_v21 = vmov 0.0   ;;  %vm239_vm4 = vmmov 0   ;;  %vm196_vm5 = vcmask 519168  }
   0x2   :  { %v19_v2 = vld [vmem:[%s302_s1] sm:$0xff]  ;;  %214 = vmatprep.subr.msk.mxu0 %vm23_vm0, %v22_v1  ;;  %v20_v3 = vld [vmem:[%s302_s1 + $0x8] sm:$0xf]  ;;  %221 = vmatprep.subr.bf16.mxu1 %v238_v21 }
   0x3   :  { %218 = vmatprep.mubr.msk.f32.mxu0 %vm23_vm0, %v19_v2  ;;  %215 = vmatpush3.xpose.msk.msra.mxu0 %vm23_vm0, %v22_v1  ;;  %v229_v22 = vld [vmem:[%s304_s3] sm:$0x3f]  }
   0x4   :  { %216 = vmatprep.subr.msk.mxu0 %vm23_vm0, %v21_v0  ;;  %223 = vmatprep.mubr.msk.bf16.mxu1 %vm239_vm4, %v238_v21  ;;  %v152_v23 = vsel %vm150_vm3, %v229_v22, 0 }
   0x5   :  { %222 = vmatpush3.bf16.msra.mxu1 %v152_v23 }
   0x7   :  { %217 = vmatpush3.xpose.msk.msra.mxu0 %vm23_vm0, %v21_v0 }
   0xa   :  { %219 = vmatmul.mubr.msk.f32.vlgmr.msra.gmra.mxu0 %vm23_vm0, %v20_v3 }
  0xca   :  { %v220_v4 = vpop.f32.mrf.mxu0 }
  0xcb   :  { %v117_v7 = vsel %vm116_vm2, %v220_v4, -inf }
  0xcc   :  { %v102_v5 = vpop.f32.mrf.mxu0 }
  0xcd   :  { %v113_v6 = vsel %vm112_vm1, %v102_v5, -inf }
  0xce   :  { %114 = vmax.xlane.f32.xlu0 %v113_v6 }
  0xd2   :  { %118 = vmax.xlane.f32.xlu0 %v117_v7 }
 0x157   :  { %v115_v8 = vpop.xlane.xlu0 %114 }
 0x158   :  { %v120_v10 = vsub.f32 %v102_v5, %v115_v8 }
 0x15a   :  { %v123_v11 = vmul.f32 %v122_v9, %v120_v10 }
 0x15b   :  { %v119_v12 = vpop.xlane.xlu0 %118 }
 0x15c   :  { %v125_v13 = vmul.f32 1.442695, %v123_v11  ;;  %v121_v14 = vsub.f32 %v220_v4, %v119_v12 }
 0x15e   :  { %230 = vpow2.f32 %v125_v13  ;;  %v124_v15 = vmul.f32 %v122_v9, %v121_v14 }
 0x160   :  { %v127_v16 = vmul.f32 1.442695, %v124_v15 }
 0x162   :  { %232 = vpow2.f32 %v127_v16 }
 0x16b   :  { %v231_v17 = vpop.eup %230 }
 0x16c   :  { %v129_v18 = vsel %vm112_vm1, %v231_v17, 0.0 }
 0x16d   :  { %130 = vadd.xlane.f32.xlu1 %v129_v18 }
 0x16f   :  { %v233_v19 = vpop.eup %232 }
 0x170   :  { %v132_v20 = vsel %vm116_vm2, %v233_v19, 0.0 }
 0x171   :  { %133 = vadd.xlane.f32.xlu1 %v132_v20 }
 0x1f6   :  { %v131_v24 = vpop.xlane.xlu1 %130 }
 0x1f7   :  { %234 = vrcp.f32 %v131_v24 }
 0x1fa   :  { %v134_v25 = vpop.xlane.xlu1 %133 }
 0x1fb   :  { %236 = vrcp.f32 %v134_v25 }
 0x204   :  { %v235_v26 = vpop.eup %234 }
 0x205   :  { %v137_v28 = vmul.f32 %v235_v26, %v231_v17 }
 0x208   :  { %v237_v27 = vpop.eup %236 }
 0x209   :  { %v138_v29 = vmul.f32 %v237_v27, %v233_v19 }
 0x20b   :  { %v139_v30 = vpack.c.bf16 %v138_v29, %v137_v28 }
 0x20d   :  { %224 = vmatmul.mubr.msk.bf16.vlgmr.msra.gmra.mxu1 %vm112_vm1, %v139_v30 }
 0x2cd   :  { %v188_v31 = vpop.f32.mrf.mxu1 }
 0x2ce   :  { %195 = vst.msk [vmem:[%s305_s4] sm:$0xff] %vm23_vm0, %v188_v31 }
 0x2cf   :  { %v225_v32 = vpop.f32.mrf.mxu1 }
 0x2d1   :  { %v191_v33 = vpop.f32.mrf.mxu1 }
 0x2d2   :  { %197 = vst.msk [vmem:[%s305_s4 + $0x8] sm:$0xf] %vm196_vm5, %v191_v33 }
 0x2d3   :  { %v226_v34 = vpop.f32.mrf.mxu1 }

</bundles_post_ra>
